<compile_context>
chip_gen: v6e
topology: v6e:2x2x1
jax: 0.10.0
libtpu: 0.0.40
codegen_flags: <defaults>
</compile_context>

<pallas_src>
import jax
import jax.numpy as jnp
from jax.experimental import pallas as pl
from jax.experimental.pallas import tpu as pltpu

_SMALL = 1e-6
_BETA = 1.0

# Per-input, per-pipeline-buffer VMEM tile target (bytes).
_TILE_TARGET_BYTES = 2 * 1024 * 1024


def _f1_loss_kernel(logits_ref, labels_ref, fs_ref):
    # (TB, C) tile: sigmoid + one elementwise product + three row reductions.
    p = jax.nn.sigmoid(logits_ref[...].astype(jnp.float32))
    l = labels_ref[...].astype(jnp.float32)

    tp = jnp.sum(l * p, axis=1, keepdims=True)      # (TB, 1)
    sum_p = jnp.sum(p, axis=1, keepdims=True)       # = tp + fp
    sum_l = jnp.sum(l, axis=1, keepdims=True)       # = tp + fn

    precise = tp / (sum_p + _SMALL)
    recall = tp / (sum_l + _SMALL)
    b2 = _BETA * _BETA
    fs = (1.0 + b2) * precise * recall / (b2 * precise + recall + _SMALL)
    fs_ref[...] = fs


def f1_loss(logits: jax.Array, labels: jax.Array) -> jax.Array:
    """Pallas implementation of F1_loss.forward(logits, labels) -> scalar."""
    assert logits.shape == labels.shape and logits.ndim == 2
    B, C = logits.shape
    itemsize = max(jnp.dtype(logits.dtype).itemsize,
                   jnp.dtype(labels.dtype).itemsize)

    # Rows per tile: as many as fit the per-input budget, multiple of 8,
    # but never more than the (8-rounded) batch size.
    tb = _TILE_TARGET_BYTES // max(1, C * itemsize)
    tb = max(8, (tb // 8) * 8)
    tb = min(tb, ((B + 7) // 8) * 8)

    grid = pl.cdiv(B, tb)

    # Actual VMEM footprint (2 inputs + 1 output, double-buffered) + headroom.
    vmem_need = 2 * 2 * tb * C * itemsize + 2 * tb * 4
    vmem_limit = int(min(max(2 * vmem_need, 32 * 1024 * 1024),
                         128 * 1024 * 1024))

    fs = pl.pallas_call(
        _f1_loss_kernel,
        out_shape=jax.ShapeDtypeStruct((B, 1), jnp.float32),
        grid=(grid,),
        in_specs=[
            pl.BlockSpec((tb, C), lambda i: (i, 0)),
            pl.BlockSpec((tb, C), lambda i: (i, 0)),
        ],
        out_specs=pl.BlockSpec((tb, 1), lambda i: (i, 0)),
        compiler_params=pltpu.CompilerParams(
            dimension_semantics=("parallel",),
            vmem_limit_bytes=vmem_limit),
        cost_estimate=pl.CostEstimate(
            flops=6 * B * C,
            transcendentals=B * C,
            bytes_accessed=2 * B * C * itemsize + B * 4),
    )(logits, labels)

    # Tiny epilogue in plain JAX: mean over the batch, then 1 - mean.
    return 1.0 - jnp.mean(fs)


def _f1_loss_ref(logits, labels):
    # Pure-JAX reference mirroring the PyTorch module exactly.
    p = jax.nn.sigmoid(logits.astype(jnp.float32))
    l = labels.astype(jnp.float32)
    tp = jnp.sum(l * p, axis=1)
    fp = jnp.sum((1 - l) * p, axis=1)
    fn = jnp.sum(l * (1 - p), axis=1)
    precise = tp / (tp + fp + _SMALL)
    recall = tp / (tp + fn + _SMALL)
    b2 = _BETA * _BETA
    fs = (1 + b2) * precise * recall / (b2 * precise + recall + _SMALL)
    return 1.0 - jnp.mean(fs)


if __name__ == "__main__":
    key = jax.random.PRNGKey(0)
    k1, k2, k3, k4 = jax.random.split(key, 4)

    # Case 1: small, tile-friendly (batch, num_classes).
    B, C = 8, 128
    logits = jax.random.normal(k1, (B, C), dtype=jnp.float32)
    labels = (jax.random.uniform(k2, (B, C)) > 0.5).astype(jnp.float32)
    loss = jax.block_until_ready(f1_loss(logits, labels))
    ref = jax.block_until_ready(_f1_loss_ref(logits, labels))
    assert jnp.allclose(loss, ref, atol=1e-5, rtol=1e-5), (loss, ref)

    # Case 2: unaligned shape exercising the partial last-block path.
    B2, C2 = 37, 100
    logits2 = jax.random.normal(k3, (B2, C2), dtype=jnp.float32)
    labels2 = (jax.random.uniform(k4, (B2, C2)) > 0.5).astype(jnp.float32)
    loss2 = jax.block_until_ready(f1_loss(logits2, labels2))
    ref2 = jax.block_until_ready(_f1_loss_ref(logits2, labels2))
    assert jnp.allclose(loss2, ref2, atol=1e-5, rtol=1e-5), (loss2, ref2)

    print("KERNEL_OK")
</pallas_src>

<mosaic_0001>
module attributes {stable_mosaic.version = 11 : i64} {
  func.func @_f1_loss_kernel(%arg0: i32, %arg1: memref<8x128xf32, #tpu.memory_space<vmem>>, %arg2: memref<8x128xf32, #tpu.memory_space<vmem>>, %arg3: memref<8x1xf32, #tpu.memory_space<vmem>>) attributes {dimension_semantics = [#tpu.dimension_semantics<parallel>], iteration_bounds = array<i64: 1>, scalar_prefetch = 0 : i64, scratch_operands = 0 : i64, tpu.core_type = #tpu.core_type<tc>, window_params = [{transform_indices = @transform_0, window_bounds = array<i64: 8, 128>}, {transform_indices = @transform_1, window_bounds = array<i64: 8, 128>}, {transform_indices = @transform_2, window_bounds = array<i64: 8, 1>}]} {
    %c0 = arith.constant 0 : index
    %c0_0 = arith.constant 0 : index
    %0 = vector.load %arg1[%c0, %c0_0] : memref<8x128xf32, #tpu.memory_space<vmem>>, vector<8x128xf32>
    %1 = arith.negf %0 : vector<8x128xf32>
    %2 = math.exp %1 : vector<8x128xf32>
    %cst = arith.constant 1.000000e+00 : f32
    %3 = vector.broadcast %cst : f32 to vector<8x128xf32>
    %4 = arith.addf %3, %2 : vector<8x128xf32>
    %5 = arith.divf %3, %4 : vector<8x128xf32>
    %c0_1 = arith.constant 0 : index
    %c0_2 = arith.constant 0 : index
    %6 = vector.load %arg2[%c0_1, %c0_2] : memref<8x128xf32, #tpu.memory_space<vmem>>, vector<8x128xf32>
    %7 = arith.mulf %6, %5 : vector<8x128xf32>
    %cst_3 = arith.constant dense<0.000000e+00> : vector<8xf32>
    %8 = vector.multi_reduction <add>, %7, %cst_3 [1] : vector<8x128xf32> to vector<8xf32>
    %9 = vector.shape_cast %8 : vector<8xf32> to vector<8x1xf32>
    %cst_4 = arith.constant dense<0.000000e+00> : vector<8xf32>
    %10 = vector.multi_reduction <add>, %5, %cst_4 [1] : vector<8x128xf32> to vector<8xf32>
    %11 = vector.shape_cast %10 : vector<8xf32> to vector<8x1xf32>
    %cst_5 = arith.constant dense<0.000000e+00> : vector<8xf32>
    %12 = vector.multi_reduction <add>, %6, %cst_5 [1] : vector<8x128xf32> to vector<8xf32>
    %13 = vector.shape_cast %12 : vector<8xf32> to vector<8x1xf32>
    %cst_6 = arith.constant 9.99999997E-7 : f32
    %14 = vector.broadcast %cst_6 : f32 to vector<8x1xf32>
    %15 = arith.addf %11, %14 : vector<8x1xf32>
    %16 = arith.divf %9, %15 : vector<8x1xf32>
    %cst_7 = arith.constant 9.99999997E-7 : f32
    %17 = vector.broadcast %cst_7 : f32 to vector<8x1xf32>
    %18 = arith.addf %13, %17 : vector<8x1xf32>
    %19 = arith.divf %9, %18 : vector<8x1xf32>
    %cst_8 = arith.constant 2.000000e+00 : f32
    %20 = vector.broadcast %cst_8 : f32 to vector<8x1xf32>
    %21 = arith.mulf %20, %16 : vector<8x1xf32>
    %22 = arith.mulf %21, %19 : vector<8x1xf32>
    %cst_9 = arith.constant 1.000000e+00 : f32
    %23 = vector.broadcast %cst_9 : f32 to vector<8x1xf32>
    %24 = arith.mulf %23, %16 : vector<8x1xf32>
    %25 = arith.addf %24, %19 : vector<8x1xf32>
    %cst_10 = arith.constant 9.99999997E-7 : f32
    %26 = vector.broadcast %cst_10 : f32 to vector<8x1xf32>
    %27 = arith.addf %25, %26 : vector<8x1xf32>
    %28 = arith.divf %22, %27 : vector<8x1xf32>
    %c0_11 = arith.constant 0 : index
    %c0_12 = arith.constant 0 : index
    %29 = vector.load %arg3[%c0_11, %c0_12] : memref<8x1xf32, #tpu.memory_space<vmem>>, vector<8x1xf32>
    tpu.vector_store %arg3[%c0_11, %c0_12], %28 {strides = array<i32>} : memref<8x1xf32, #tpu.memory_space<vmem>>, vector<8x1xf32>,
    return
  }
  func.func @transform_0(%arg0: i32) -> (i32, i32) {
    %c0_i32 = arith.constant 0 : i32
    %c0_i32_0 = arith.constant 0 : i32
    return %arg0, %c0_i32 : i32, i32
  }
  func.func @transform_1(%arg0: i32) -> (i32, i32) {
    %c0_i32 = arith.constant 0 : i32
    %c0_i32_0 = arith.constant 0 : i32
    return %arg0, %c0_i32 : i32, i32
  }
  func.func @transform_2(%arg0: i32) -> (i32, i32) {
    %c0_i32 = arith.constant 0 : i32
    %c0_i32_0 = arith.constant 0 : i32
    return %arg0, %c0_i32 : i32, i32
  }
}

</mosaic_0001>

<bundles_post_ra>
// kernel: tpu_custom_call.1
= control target key start
LH: loop header
LB: loop body
LE: loop exit
PB: predicated region body
PF: predicated region fallthrough
CT: control target
= control target key end

     0   :  { %7 = vsyncpa [#allocation3], 0  ;;  %s153_s0 = inlined_call_operand.hbm [shape: f32[8,128], index: 0, kind: input, shape index: {}]   ;;  %s154_s1 = inlined_call_operand.hbm [shape: f32[8,128], index: 1, kind: input, shape index: {}]   ;;  %s155_s2 = inlined_call_operand.vmem [shape: f32[8,1], index: 2, kind: output, shape index: {}]  }
   0x1   :  { %8 = vsyncpa [#allocation5], 0  ;;  %s127_s9 = smov [#allocation2]   ;;  %s128_s11 = smov [#allocation4]  }
   0x2   :  { %s15_s10 = sshll.u32 %s127_s9, 4  ;;  %s25_s12 = sshll.u32 %s128_s11, 4  ;;  %s16_s10 = int_to_ptr.vmem [resolvable:$true] %s15_s10  ;;  %s26_s12 = int_to_ptr.vmem [resolvable:$true] %s25_s12 }
   0x3   :  { %s91_s13 = scalar_lea.vmem %s16_s10, 128  ;;  %p96_p1 = scmp.lt.s32.totalorder %s16_s10, %s16_s10 }
   0x4   :  { %p92_p0 = scmp.ne.s32.totalorder %s16_s10, %s91_s13  ;;  %p97_p2 = scmp.lt.s32.totalorder %s91_s13, %s91_s13 }
   0x6   :  { %p98_p3 = por %p97_p2, %p96_p1 }
   0x8   :  { %p99_p4 = pnand %p98_p3, %p92_p0 }
   0xa   :  { %102 = shalt.err (!%p99_p4)
}
   0xb   :  { %18 = dma.hbm_to_vmem [thread:$0]  %s153_s0, 128, %s16_s10, [#allocation3]  }
   0xc   :  { %s111_s16 = scalar_lea.vmem %s26_s12, 128  ;;  %p116_p6 = scmp.lt.s32.totalorder %s26_s12, %s26_s12 }
   0xd   :  { %p112_p5 = scmp.ne.s32.totalorder %s26_s12, %s111_s16  ;;  %p117_p7 = scmp.lt.s32.totalorder %s111_s16, %s111_s16 }
   0xf   :  { %p118_p8 = por %p117_p7, %p116_p6 }
  0x11   :  { %p119_p9 = pnand %p118_p8, %p112_p5 }
  0x13   :  { %122 = shalt.err (!%p119_p9)
}
  0x14   :  { %28 = dma.hbm_to_vmem [thread:$0]  %s154_s1, 128, %s26_s12, [#allocation5]  }
  0x15   :  { %123 = dma.done.wait [#allocation3], 128  }
  0x16   :  { %124 = vsyncadd [#allocation3], 4294967168 }
  0x17   :  { %125 = dma.done.wait [#allocation5], 128  }
  0x18   :  { %126 = vsyncadd [#allocation5], 4294967168  ;;  %v35_v0 = vld [vmem:[#allocation2] sm:$0xff]  ;;  %v42_v5 = vld [vmem:[#allocation4] sm:$0xff]  ;;  %vm62_vm0 = vcmask 7168  }
  0x19   :  { %v70_v1 = vmul.f32 -1.442695, %v35_v0 }
  0x1b   :  { %73 = vpow2.f32 %v70_v1 }
  0x28   :  { %v74_v2 = vpop.eup %73 }
  0x29   :  { %v39_v3 = vadd.f32 1.0, %v74_v2 }
  0x2b   :  { %75 = vrcp.f32 %v39_v3 }
  0x38   :  { %v76_v4 = vpop.eup %75 }
  0x39   :  { %46 = vadd.xlane.f32.xlu0 %v76_v4  ;;  %v43_v6 = vmul.f32 %v76_v4, %v42_v5 }
  0x3b   :  { %44 = vadd.xlane.f32.xlu1 %v43_v6 }
  0x3d   :  { %48 = vadd.xlane.f32.xlu0 %v42_v5 }
  0xc2   :  { %v47_v7 = vpop.xlane.xlu0 %46 }
  0xc3   :  { %v50_v8 = vadd.f32 1e-06, %v47_v7 }
  0xc4   :  { %v45_v12 = vpop.xlane.xlu1 %44 }
  0xc5   :  { %77 = vrcp.f32 %v50_v8 }
  0xc6   :  { %v49_v9 = vpop.xlane.xlu0 %48 }
  0xc7   :  { %v53_v10 = vadd.f32 1e-06, %v49_v9 }
  0xc9   :  { %79 = vrcp.f32 %v53_v10 }
  0xd2   :  { %v78_v11 = vpop.eup %77 }
  0xd3   :  { %v52_v14 = vmul.f32 %v78_v11, %v45_v12 }
  0xd5   :  { %v56_v18 = vmul.f32 2.0, %v52_v14 }
  0xd6   :  { %v80_v13 = vpop.eup %79 }
  0xd7   :  { %v55_v15 = vmul.f32 %v80_v13, %v45_v12 }
  0xd9   :  { %v58_v16 = vadd.f32 %v55_v15, %v52_v14  ;;  %v57_v19 = vmul.f32 %v56_v18, %v55_v15 }
  0xdb   :  { %v59_v17 = vadd.f32 1e-06, %v58_v16 }
  0xdd   :  { %81 = vrcp.f32 %v59_v17 }
  0xea   :  { %v82_v20 = vpop.eup %81 }
  0xeb   :  { %v61_v21 = vmul.f32 %v82_v20, %v57_v19 }
  0xed   :  { %63 = vst.msk [vmem:[%s155_s2] sm:$0xff] %vm62_vm0, %v61_v21 }
  0xee   :  { %68 = vsyncpa [#allocation3], 1 }
  0xef   :  { %69 = vsyncpa [#allocation5], 1 }

</bundles_post_ra>
